<compile_context>
chip_gen: v6e
topology: v6e:2x2x1
jax: 0.10.0
libtpu: 0.0.40
codegen_flags: <defaults>
</compile_context>

<pallas_src>
import functools

import jax
import jax.numpy as jnp
import numpy as np
from jax import lax
from jax.experimental import pallas as pl
from jax.experimental.pallas import tpu as pltpu


def _round_up(x, m):
    return (x + m - 1) // m * m


# ----------------------------------------------------------------------------------
# Pallas kernel: one chunk of KC anti-diagonals of the soft-DTW DP for one batch tile.
# ----------------------------------------------------------------------------------
def _sdtw_chunk_kernel(d_ref, out_ref, r1_ref, r2_ref, *, N, M, KC, n_diags,
                       gamma, bandwidth, out_col0):
    """d_ref  : (KC, BT, NP) VMEM -- skewed distances; lane i -> D[b, i-1, kk-i-1]
       out_ref: (BT, 128)    VMEM -- 128-lane slab containing column N of R[N, :]
       r1_ref : (BT, NP)     VMEM scratch -- newest DP diagonal at chunk boundary
       r2_ref : (BT, NP)     VMEM scratch -- second newest DP diagonal at boundary
    """
    kc = pl.program_id(1)                      # chunk index along the diagonal axis
    BT, NP = r1_ref.shape
    inv_gamma = jnp.float32(1.0 / gamma)
    gamma_f = jnp.float32(gamma)

    lane_i = lax.broadcasted_iota(jnp.int32, (BT, NP), 1)   # DP row index i on lanes

    @pl.when(kc == 0)
    def _init():
        # diagonal 0 of R: only R[0,0] = 0 ; diagonal 1: all +inf.
        r2_ref[...] = jnp.where(lane_i == 0, 0.0, jnp.inf).astype(jnp.float32)
        r1_ref[...] = jnp.full((BT, NP), jnp.inf, dtype=jnp.float32)

    # Register-carried DP state for this chunk (no per-diagonal VMEM round-trip).
    r2 = r2_ref[...]
    r1 = r1_ref[...]

    last_kc = (n_diags - 1) // KC              # chunk holding the final diagonal
    last_kd = (n_diags - 1) % KC
    kk_base = kc * KC + 2                      # DP anti-diagonal index kk of kd == 0

    for kd in range(KC):                       # static, fully unrolled
        kk = kk_base + kd
        d = d_ref[kd]                          # (BT, NP)

        # Predecessors of cell (i, j=kk-i), aligned so lane i holds its own operands.
        r_diag = pltpu.roll(r2, shift=1, axis=1)             # R[i-1, j-1]
        r_up = pltpu.roll(r1, shift=1, axis=1)               # R[i-1, j  ]
        r_left = r1                                          # R[i  , j-1]

        a = r_diag * (-inv_gamma)
        b = r_up * (-inv_gamma)
        c = r_left * (-inv_gamma)
        # softmin with 2 exps instead of 3: exp(max - max) == 1 exactly.
        ab_min = jnp.minimum(a, b)
        ab_max = jnp.maximum(a, b)
        rmax = jnp.maximum(ab_max, c)
        mid = jnp.maximum(ab_min, jnp.minimum(ab_max, c))    # median of (a, b, c)
        lo = jnp.minimum(ab_min, c)
        rsum = 1.0 + jnp.exp(mid - rmax) + jnp.exp(lo - rmax)
        softmin = -gamma_f * (jnp.log(rsum) + rmax)
        val = d + softmin

        # Valid DP cells on this diagonal: 1 <= i <= N and 1 <= j = kk - i <= M.
        i_lo = jnp.maximum(1, kk - M)
        i_hi = jnp.minimum(N, kk - 1)
        valid = (lane_i >= i_lo) & (lane_i <= i_hi)
        if bandwidth > 0.0:                                  # Sakoe-Chiba pruning
            valid = valid & (jnp.abs(2 * lane_i - kk).astype(jnp.float32) <= bandwidth)

        # Invalid lanes may transiently be NaN (all-inf predecessors); the select
        # overwrites them with +inf BEFORE the value is reused as a predecessor,
        # matching the CUDA kernel which never touches those cells.
        new_diag = jnp.where(valid, val, jnp.float32(jnp.inf))

        if kd == last_kd:
            # Final diagonal kk = N + M: lane N holds R[N, M]. Store only the one
            # 128-lane slab containing column N, and only on the last chunk.
            @pl.when(kc == last_kc)
            def _write(nd=new_diag):
                out_ref[...] = nd[:, out_col0:out_col0 + 128]

        r2, r1 = r1, new_diag                                # rotate roles in vregs

    # Spill the two live diagonals once per chunk.
    r2_ref[...] = r2
    r1_ref[...] = r1


# ----------------------------------------------------------------------------------
# Wrapper: MXU distances, skew to diagonal-major layout, pallas_call.
# ----------------------------------------------------------------------------------
def _pairwise_sq_dists(X, Y):
    """Squared Euclidean distances (B, N, M), Gram matrix on the MXU."""
    g = jnp.einsum("bnd,bmd->bnm", X, Y,
                   preferred_element_type=jnp.float32,
                   precision=jax.lax.Precision.HIGH)
    x2 = jnp.sum(X * X, axis=-1)
    y2 = jnp.sum(Y * Y, axis=-1)
    return jnp.maximum(x2[:, :, None] + y2[:, None, :] - 2.0 * g, 0.0)


def _skew_to_diagonals(dist, b_pad, n_pad, d_pad):
    """(B, N, M) -> (d_pad, b_pad, n_pad) with dd[c, b, i] = dist[b, i-1, c-(i-1)]."""
    B, N, M = dist.shape
    W = N + M
    dpad = jnp.pad(dist, ((0, 0), (0, 0), (0, W - M)))            # (B, N, W)
    flat = dpad.reshape(B, N * W)
    flat = jnp.pad(flat, ((0, 0), (0, (N + 1) * (W - 1) - N * W)))
    sk = flat.reshape(B, N + 1, W - 1)[:, :N, :]                  # sk[b,i,i+j] = dist[b,i,j]
    dd = jnp.transpose(sk, (2, 0, 1))                             # (N+M-1, B, N)
    dd = jnp.pad(dd, ((0, d_pad - (N + M - 1)), (0, b_pad - B), (1, n_pad - N - 1)))
    return dd


def soft_dtw_forward(X, Y, gamma=1.0, bandwidth=0.0):
    """X: (B, N, D), Y: (B, M, D)  ->  (B,) soft-DTW values (float32)."""
    B, N, Dx = X.shape
    By, M, Dy = Y.shape
    assert B == By and Dx == Dy

    X = X.astype(jnp.float32)
    Y = Y.astype(jnp.float32)

    KC = 8                                       # diagonals per grid step
    n_pad = _round_up(N + 1, 128)                # DP row index i = 0..N on the lane axis

    batch_tile = min(_round_up(B, 8), 128)       # sublanes per grid step
    b_pad = _round_up(B, batch_tile)
    # Prefer >= 2 batch tiles so the "parallel" axis feeds both v7x TensorCores.
    if b_pad // batch_tile < 2 and batch_tile > 8:
        batch_tile = _round_up(batch_tile // 2, 8)
        b_pad = _round_up(B, batch_tile)
    n_bt = b_pad // batch_tile

    n_diags = N + M - 1
    n_kc = pl.cdiv(n_diags, KC)
    d_pad = n_kc * KC
    out_col0 = (N // 128) * 128                  # 128-lane slab containing column N

    dd = _skew_to_diagonals(_pairwise_sq_dists(X, Y), b_pad, n_pad, d_pad)

    kernel = functools.partial(
        _sdtw_chunk_kernel, N=N, M=M, KC=KC, n_diags=n_diags,
        gamma=float(gamma), bandwidth=float(bandwidth), out_col0=out_col0)

    # VMEM: double-buffered dd chunk + 2 DP scratch slabs + output slab, with margin.
    slab = batch_tile * n_pad * 4
    need = 2 * KC * slab + 2 * slab + 2 * batch_tile * 128 * 4 + (1 << 20)
    vmem_limit = int(min(48 * 2**20, max(8 * 2**20, 2 * need)))

    out = pl.pallas_call(
        kernel,
        out_shape=jax.ShapeDtypeStruct((b_pad, 128), jnp.float32),
        grid=(n_bt, n_kc),
        in_specs=[pl.BlockSpec((KC, batch_tile, n_pad), lambda bt, kc: (kc, bt, 0))],
        out_specs=pl.BlockSpec((batch_tile, 128), lambda bt, kc: (bt, 0)),
        scratch_shapes=[
            pltpu.VMEM((batch_tile, n_pad), jnp.float32),   # newest diagonal
            pltpu.VMEM((batch_tile, n_pad), jnp.float32),   # second newest diagonal
        ],
        compiler_params=pltpu.CompilerParams(
            dimension_semantics=("parallel", "arbitrary"),
            vmem_limit_bytes=vmem_limit,
        ),
    )(dd)
    return out[:B, N - out_col0]


class SoftDTW:
    """JAX/Pallas re-implementation of the PyTorch SoftDTW module (forward only)."""

    def __init__(self, use_cuda=True, gamma=1.0, normalize=False, bandwidth=None,
                 dist_func=None):
        del use_cuda, dist_func  # TPU kernel; default squared-Euclidean distance only
        self.gamma = float(gamma)
        self.normalize = normalize
        self.bandwidth = 0.0 if bandwidth is None else float(bandwidth)

    def __call__(self, X, Y):
        if self.normalize:
            x = jnp.concatenate([X, X, Y], axis=0)
            y = jnp.concatenate([Y, X, Y], axis=0)
            out = soft_dtw_forward(x, y, self.gamma, self.bandwidth)
            b = X.shape[0]
            out_xy, out_xx, out_yy = out[:b], out[b:2 * b], out[2 * b:]
            return out_xy - 0.5 * (out_xx + out_yy)
        return soft_dtw_forward(X, Y, self.gamma, self.bandwidth)


# ----------------------------------------------------------------------------------
# Pure numpy (float64) reference mirroring the CUDA kernel semantics.
# ----------------------------------------------------------------------------------
def _sdtw_reference(X, Y, gamma, bandwidth):
    X = np.asarray(X, dtype=np.float64)
    Y = np.asarray(Y, dtype=np.float64)
    D = ((X[:, :, None, :] - Y[:, None, :, :]) ** 2).sum(-1)
    B, N, M = D.shape
    R = np.full((B, N + 1, M + 1), np.inf)
    R[:, 0, 0] = 0.0
    for i in range(1, N + 1):
        for j in range(1, M + 1):
            if bandwidth > 0 and abs(i - j) > bandwidth:
                continue
            r0 = -R[:, i - 1, j - 1] / gamma
            r1 = -R[:, i - 1, j] / gamma
            r2 = -R[:, i, j - 1] / gamma
            rmax = np.maximum(np.maximum(r0, r1), r2)
            rsum = np.exp(r0 - rmax) + np.exp(r1 - rmax) + np.exp(r2 - rmax)
            softmin = -gamma * (np.log(rsum) + rmax)
            R[:, i, j] = D[:, i - 1, j - 1] + softmin
    return R[:, N, M]


if __name__ == "__main__":
    key = jax.random.PRNGKey(0)
    kx, ky, kx2, ky2 = jax.random.split(key, 4)

    # Test 1: square sequences, no bandwidth pruning.
    B, L, D = 2, 8, 32
    X = jax.random.normal(kx, (B, L, D), dtype=jnp.float32)
    Y = jax.random.normal(ky, (B, L, D), dtype=jnp.float32)
    sdtw = SoftDTW(use_cuda=True, gamma=1.0, normalize=False, bandwidth=None)
    out = jax.block_until_ready(sdtw(X, Y))
    ref = _sdtw_reference(np.asarray(X), np.asarray(Y), gamma=1.0, bandwidth=0.0)
    np.testing.assert_allclose(np.asarray(out), ref, rtol=1e-3, atol=1e-2)

    # Test 2: rectangular sequences with Sakoe-Chiba band and gamma != 1.
    X2 = jax.random.normal(kx2, (2, 8, 16), dtype=jnp.float32)
    Y2 = jax.random.normal(ky2, (2, 5, 16), dtype=jnp.float32)
    sdtw_band = SoftDTW(use_cuda=True, gamma=0.5, normalize=False, bandwidth=3.0)
    out2 = jax.block_until_ready(sdtw_band(X2, Y2))
    ref2 = _sdtw_reference(np.asarray(X2), np.asarray(Y2), gamma=0.5, bandwidth=3.0)
    np.testing.assert_allclose(np.asarray(out2), ref2, rtol=1e-3, atol=1e-2)

    print("KERNEL_OK")
</pallas_src>

<mosaic_0001>
module attributes {stable_mosaic.version = 11 : i64} {
  func.func @_sdtw_chunk_kernel(%arg0: i32, %arg1: i32, %arg2: memref<8x8x128xf32, #tpu.memory_space<vmem>>, %arg3: memref<8x128xf32, #tpu.memory_space<vmem>>, %arg4: memref<8x128xf32, #tpu.memory_space<vmem>>, %arg5: memref<8x128xf32, #tpu.memory_space<vmem>>) attributes {dimension_semantics = [#tpu.dimension_semantics<parallel>, #tpu.dimension_semantics<arbitrary>], iteration_bounds = array<i64: 1, 2>, scalar_prefetch = 0 : i64, scratch_operands = 2 : i64, tpu.core_type = #tpu.core_type<tc>, window_params = [{transform_indices = @transform_0, window_bounds = array<i64: 8, 8, 128>}, {transform_indices = @transform_1, window_bounds = array<i64: 8, 128>}]} {
    %0 = tpu.iota {dimensions = array<i32: 1>} : vector<8x128xi32>
    %c0_i32 = arith.constant 0 : i32
    %1 = arith.cmpi eq, %arg1, %c0_i32 : i32
    %2 = arith.extui %1 : i1 to i32
    %c0_i32_0 = arith.constant 0 : i32
    %3 = arith.cmpi ne, %2, %c0_i32_0 : i32
    scf.if %3 {
      %c0_i32_156 = arith.constant 0 : i32
      %365 = vector.broadcast %c0_i32_156 : i32 to vector<8x128xi32>
      %366 = arith.cmpi eq, %0, %365 : vector<8x128xi32>
      %cst_157 = arith.constant 0.000000e+00 : f32
      %cst_158 = arith.constant 0x7F800000 : f32
      %367 = vector.broadcast %cst_157 : f32 to vector<8x128xf32>
      %368 = vector.broadcast %cst_158 : f32 to vector<8x128xf32>
      %369 = arith.select %366, %367, %368 : vector<8x128xi1>, vector<8x128xf32>
      %c0_159 = arith.constant 0 : index
      %c0_160 = arith.constant 0 : index
      %370 = vector.load %arg5[%c0_159, %c0_160] : memref<8x128xf32, #tpu.memory_space<vmem>>, vector<8x128xf32>
      tpu.vector_store %arg5[%c0_159, %c0_160], %369 {strides = array<i32>} : memref<8x128xf32, #tpu.memory_space<vmem>>, vector<8x128xf32>,
      %cst_161 = arith.constant 0x7F800000 : f32
      %371 = vector.broadcast %cst_161 : f32 to vector<8x128xf32>
      %c0_162 = arith.constant 0 : index
      %c0_163 = arith.constant 0 : index
      %372 = vector.load %arg4[%c0_162, %c0_163] : memref<8x128xf32, #tpu.memory_space<vmem>>, vector<8x128xf32>
      tpu.vector_store %arg4[%c0_162, %c0_163], %371 {strides = array<i32>} : memref<8x128xf32, #tpu.memory_space<vmem>>, vector<8x128xf32>,
    } else {
    }
    %c0 = arith.constant 0 : index
    %c0_1 = arith.constant 0 : index
    %4 = vector.load %arg5[%c0, %c0_1] : memref<8x128xf32, #tpu.memory_space<vmem>>, vector<8x128xf32>
    %c0_2 = arith.constant 0 : index
    %c0_3 = arith.constant 0 : index
    %5 = vector.load %arg4[%c0_2, %c0_3] : memref<8x128xf32, #tpu.memory_space<vmem>>, vector<8x128xf32>
    %c8_i32 = arith.constant 8 : i32
    %6 = arith.muli %arg1, %c8_i32 : i32
    %c2_i32 = arith.constant 2 : i32
    %7 = arith.addi %6, %c2_i32 : i32
    %c0_i32_4 = arith.constant 0 : i32
    %8 = arith.addi %7, %c0_i32_4 : i32
    %c0_5 = arith.constant 0 : index
    %c0_6 = arith.constant 0 : index
    %c0_7 = arith.constant 0 : index
    %9 = vector.load %arg2[%c0_5, %c0_6, %c0_7] : memref<8x8x128xf32, #tpu.memory_space<vmem>>, vector<1x8x128xf32>
    %10 = vector.shape_cast %9 : vector<1x8x128xf32> to vector<8x128xf32>
    %c1_i32 = arith.constant 1 : i32
    %11 = tpu.dynamic_rotate %4 by %c1_i32 dim 1 : vector<8x128xf32>, i32 -> vector<8x128xf32>
    %c1_i32_8 = arith.constant 1 : i32
    %12 = tpu.dynamic_rotate %5 by %c1_i32_8 dim 1 : vector<8x128xf32>, i32 -> vector<8x128xf32>
    %cst = arith.constant 0.000000e+00 : f32
    %cst_9 = arith.constant 1.000000e+00 : f32
    %13 = arith.subf %cst, %cst_9 : f32
    %14 = vector.broadcast %13 : f32 to vector<8x128xf32>
    %15 = arith.mulf %11, %14 : vector<8x128xf32>
    %cst_10 = arith.constant 0.000000e+00 : f32
    %cst_11 = arith.constant 1.000000e+00 : f32
    %16 = arith.subf %cst_10, %cst_11 : f32
    %17 = vector.broadcast %16 : f32 to vector<8x128xf32>
    %18 = arith.mulf %12, %17 : vector<8x128xf32>
    %cst_12 = arith.constant 0.000000e+00 : f32
    %cst_13 = arith.constant 1.000000e+00 : f32
    %19 = arith.subf %cst_12, %cst_13 : f32
    %20 = vector.broadcast %19 : f32 to vector<8x128xf32>
    %21 = arith.mulf %5, %20 : vector<8x128xf32>
    %22 = arith.minimumf %15, %18 : vector<8x128xf32>
    %23 = arith.maximumf %15, %18 : vector<8x128xf32>
    %24 = arith.maximumf %23, %21 : vector<8x128xf32>
    %25 = arith.minimumf %23, %21 : vector<8x128xf32>
    %26 = arith.maximumf %22, %25 : vector<8x128xf32>
    %27 = arith.minimumf %22, %21 : vector<8x128xf32>
    %28 = arith.subf %26, %24 : vector<8x128xf32>
    %29 = math.exp %28 : vector<8x128xf32>
    %cst_14 = arith.constant 1.000000e+00 : f32
    %30 = vector.broadcast %cst_14 : f32 to vector<8x128xf32>
    %31 = arith.addf %30, %29 : vector<8x128xf32>
    %32 = arith.subf %27, %24 : vector<8x128xf32>
    %33 = math.exp %32 : vector<8x128xf32>
    %34 = arith.addf %31, %33 : vector<8x128xf32>
    %cst_15 = arith.constant 0.000000e+00 : f32
    %cst_16 = arith.constant 1.000000e+00 : f32
    %35 = arith.subf %cst_15, %cst_16 : f32
    %36 = math.log %34 : vector<8x128xf32>
    %37 = arith.addf %36, %24 : vector<8x128xf32>
    %38 = vector.broadcast %35 : f32 to vector<8x128xf32>
    %39 = arith.mulf %38, %37 : vector<8x128xf32>
    %40 = arith.addf %10, %39 : vector<8x128xf32>
    %c8_i32_17 = arith.constant 8 : i32
    %41 = arith.subi %8, %c8_i32_17 : i32
    %c1_i32_18 = arith.constant 1 : i32
    %42 = arith.maxsi %c1_i32_18, %41 : i32
    %c1_i32_19 = arith.constant 1 : i32
    %43 = arith.subi %8, %c1_i32_19 : i32
    %c8_i32_20 = arith.constant 8 : i32
    %44 = arith.minsi %c8_i32_20, %43 : i32
    %45 = vector.broadcast %42 : i32 to vector<8x128xi32>
    %46 = arith.cmpi sge, %0, %45 : vector<8x128xi32>
    %47 = vector.broadcast %44 : i32 to vector<8x128xi32>
    %48 = arith.cmpi sle, %0, %47 : vector<8x128xi32>
    %49 = arith.andi %46, %48 : vector<8x128xi1>
    %cst_21 = arith.constant 0x7F800000 : f32
    %50 = vector.broadcast %cst_21 : f32 to vector<8x128xf32>
    %51 = arith.select %49, %40, %50 : vector<8x128xi1>, vector<8x128xf32>
    %c1_i32_22 = arith.constant 1 : i32
    %52 = arith.addi %7, %c1_i32_22 : i32
    %c1 = arith.constant 1 : index
    %c0_23 = arith.constant 0 : index
    %c0_24 = arith.constant 0 : index
    %53 = vector.load %arg2[%c1, %c0_23, %c0_24] : memref<8x8x128xf32, #tpu.memory_space<vmem>>, vector<1x8x128xf32>
    %54 = vector.shape_cast %53 : vector<1x8x128xf32> to vector<8x128xf32>
    %c1_i32_25 = arith.constant 1 : i32
    %55 = tpu.dynamic_rotate %5 by %c1_i32_25 dim 1 : vector<8x128xf32>, i32 -> vector<8x128xf32>
    %c1_i32_26 = arith.constant 1 : i32
    %56 = tpu.dynamic_rotate %51 by %c1_i32_26 dim 1 : vector<8x128xf32>, i32 -> vector<8x128xf32>
    %cst_27 = arith.constant 0.000000e+00 : f32
    %cst_28 = arith.constant 1.000000e+00 : f32
    %57 = arith.subf %cst_27, %cst_28 : f32
    %58 = vector.broadcast %57 : f32 to vector<8x128xf32>
    %59 = arith.mulf %55, %58 : vector<8x128xf32>
    %cst_29 = arith.constant 0.000000e+00 : f32
    %cst_30 = arith.constant 1.000000e+00 : f32
    %60 = arith.subf %cst_29, %cst_30 : f32
    %61 = vector.broadcast %60 : f32 to vector<8x128xf32>
    %62 = arith.mulf %56, %61 : vector<8x128xf32>
    %cst_31 = arith.constant 0.000000e+00 : f32
    %cst_32 = arith.constant 1.000000e+00 : f32
    %63 = arith.subf %cst_31, %cst_32 : f32
    %64 = vector.broadcast %63 : f32 to vector<8x128xf32>
    %65 = arith.mulf %51, %64 : vector<8x128xf32>
    %66 = arith.minimumf %59, %62 : vector<8x128xf32>
    %67 = arith.maximumf %59, %62 : vector<8x128xf32>
    %68 = arith.maximumf %67, %65 : vector<8x128xf32>
    %69 = arith.minimumf %67, %65 : vector<8x128xf32>
    %70 = arith.maximumf %66, %69 : vector<8x128xf32>
    %71 = arith.minimumf %66, %65 : vector<8x128xf32>
    %72 = arith.subf %70, %68 : vector<8x128xf32>
    %73 = math.exp %72 : vector<8x128xf32>
    %cst_33 = arith.constant 1.000000e+00 : f32
    %74 = vector.broadcast %cst_33 : f32 to vector<8x128xf32>
    %75 = arith.addf %74, %73 : vector<8x128xf32>
    %76 = arith.subf %71, %68 : vector<8x128xf32>
    %77 = math.exp %76 : vector<8x128xf32>
    %78 = arith.addf %75, %77 : vector<8x128xf32>
    %cst_34 = arith.constant 0.000000e+00 : f32
    %cst_35 = arith.constant 1.000000e+00 : f32
    %79 = arith.subf %cst_34, %cst_35 : f32
    %80 = math.log %78 : vector<8x128xf32>
    %81 = arith.addf %80, %68 : vector<8x128xf32>
    %82 = vector.broadcast %79 : f32 to vector<8x128xf32>
    %83 = arith.mulf %82, %81 : vector<8x128xf32>
    %84 = arith.addf %54, %83 : vector<8x128xf32>
    %c8_i32_36 = arith.constant 8 : i32
    %85 = arith.subi %52, %c8_i32_36 : i32
    %c1_i32_37 = arith.constant 1 : i32
    %86 = arith.maxsi %c1_i32_37, %85 : i32
    %c1_i32_38 = arith.constant 1 : i32
    %87 = arith.subi %52, %c1_i32_38 : i32
    %c8_i32_39 = arith.constant 8 : i32
    %88 = arith.minsi %c8_i32_39, %87 : i32
    %89 = vector.broadcast %86 : i32 to vector<8x128xi32>
    %90 = arith.cmpi sge, %0, %89 : vector<8x128xi32>
    %91 = vector.broadcast %88 : i32 to vector<8x128xi32>
    %92 = arith.cmpi sle, %0, %91 : vector<8x128xi32>
    %93 = arith.andi %90, %92 : vector<8x128xi1>
    %cst_40 = arith.constant 0x7F800000 : f32
    %94 = vector.broadcast %cst_40 : f32 to vector<8x128xf32>
    %95 = arith.select %93, %84, %94 : vector<8x128xi1>, vector<8x128xf32>
    %c2_i32_41 = arith.constant 2 : i32
    %96 = arith.addi %7, %c2_i32_41 : i32
    %c2 = arith.constant 2 : index
    %c0_42 = arith.constant 0 : index
    %c0_43 = arith.constant 0 : index
    %97 = vector.load %arg2[%c2, %c0_42, %c0_43] : memref<8x8x128xf32, #tpu.memory_space<vmem>>, vector<1x8x128xf32>
    %98 = vector.shape_cast %97 : vector<1x8x128xf32> to vector<8x128xf32>
    %c1_i32_44 = arith.constant 1 : i32
    %99 = tpu.dynamic_rotate %51 by %c1_i32_44 dim 1 : vector<8x128xf32>, i32 -> vector<8x128xf32>
    %c1_i32_45 = arith.constant 1 : i32
    %100 = tpu.dynamic_rotate %95 by %c1_i32_45 dim 1 : vector<8x128xf32>, i32 -> vector<8x128xf32>
    %cst_46 = arith.constant 0.000000e+00 : f32
    %cst_47 = arith.constant 1.000000e+00 : f32
    %101 = arith.subf %cst_46, %cst_47 : f32
    %102 = vector.broadcast %101 : f32 to vector<8x128xf32>
    %103 = arith.mulf %99, %102 : vector<8x128xf32>
    %cst_48 = arith.constant 0.000000e+00 : f32
    %cst_49 = arith.constant 1.000000e+00 : f32
    %104 = arith.subf %cst_48, %cst_49 : f32
    %105 = vector.broadcast %104 : f32 to vector<8x128xf32>
    %106 = arith.mulf %100, %105 : vector<8x128xf32>
    %cst_50 = arith.constant 0.000000e+00 : f32
    %cst_51 = arith.constant 1.000000e+00 : f32
    %107 = arith.subf %cst_50, %cst_51 : f32
    %108 = vector.broadcast %107 : f32 to vector<8x128xf32>
    %109 = arith.mulf %95, %108 : vector<8x128xf32>
    %110 = arith.minimumf %103, %106 : vector<8x128xf32>
    %111 = arith.maximumf %103, %106 : vector<8x128xf32>
    %112 = arith.maximumf %111, %109 : vector<8x128xf32>
    %113 = arith.minimumf %111, %109 : vector<8x128xf32>
    %114 = arith.maximumf %110, %113 : vector<8x128xf32>
    %115 = arith.minimumf %110, %109 : vector<8x128xf32>
    %116 = arith.subf %114, %112 : vector<8x128xf32>
    %117 = math.exp %116 : vector<8x128xf32>
    %cst_52 = arith.constant 1.000000e+00 : f32
    %118 = vector.broadcast %cst_52 : f32 to vector<8x128xf32>
    %119 = arith.addf %118, %117 : vector<8x128xf32>
    %120 = arith.subf %115, %112 : vector<8x128xf32>
    %121 = math.exp %120 : vector<8x128xf32>
    %122 = arith.addf %119, %121 : vector<8x128xf32>
    %cst_53 = arith.constant 0.000000e+00 : f32
    %cst_54 = arith.constant 1.000000e+00 : f32
    %123 = arith.subf %cst_53, %cst_54 : f32
    %124 = math.log %122 : vector<8x128xf32>
    %125 = arith.addf %124, %112 : vector<8x128xf32>
    %126 = vector.broadcast %123 : f32 to vector<8x128xf32>
    %127 = arith.mulf %126, %125 : vector<8x128xf32>
    %128 = arith.addf %98, %127 : vector<8x128xf32>
    %c8_i32_55 = arith.constant 8 : i32
    %129 = arith.subi %96, %c8_i32_55 : i32
    %c1_i32_56 = arith.constant 1 : i32
    %130 = arith.maxsi %c1_i32_56, %129 : i32
    %c1_i32_57 = arith.constant 1 : i32
    %131 = arith.subi %96, %c1_i32_57 : i32
    %c8_i32_58 = arith.constant 8 : i32
    %132 = arith.minsi %c8_i32_58, %131 : i32
    %133 = vector.broadcast %130 : i32 to vector<8x128xi32>
    %134 = arith.cmpi sge, %0, %133 : vector<8x128xi32>
    %135 = vector.broadcast %132 : i32 to vector<8x128xi32>
    %136 = arith.cmpi sle, %0, %135 : vector<8x128xi32>
    %137 = arith.andi %134, %136 : vector<8x128xi1>
    %cst_59 = arith.constant 0x7F800000 : f32
    %138 = vector.broadcast %cst_59 : f32 to vector<8x128xf32>
    %139 = arith.select %137, %128, %138 : vector<8x128xi1>, vector<8x128xf32>
    %c3_i32 = arith.constant 3 : i32
    %140 = arith.addi %7, %c3_i32 : i32
    %c3 = arith.constant 3 : index
    %c0_60 = arith.constant 0 : index
    %c0_61 = arith.constant 0 : index
    %141 = vector.load %arg2[%c3, %c0_60, %c0_61] : memref<8x8x128xf32, #tpu.memory_space<vmem>>, vector<1x8x128xf32>
    %142 = vector.shape_cast %141 : vector<1x8x128xf32> to vector<8x128xf32>
    %c1_i32_62 = arith.constant 1 : i32
    %143 = tpu.dynamic_rotate %95 by %c1_i32_62 dim 1 : vector<8x128xf32>, i32 -> vector<8x128xf32>
    %c1_i32_63 = arith.constant 1 : i32
    %144 = tpu.dynamic_rotate %139 by %c1_i32_63 dim 1 : vector<8x128xf32>, i32 -> vector<8x128xf32>
    %cst_64 = arith.constant 0.000000e+00 : f32
    %cst_65 = arith.constant 1.000000e+00 : f32
    %145 = arith.subf %cst_64, %cst_65 : f32
    %146 = vector.broadcast %145 : f32 to vector<8x128xf32>
    %147 = arith.mulf %143, %146 : vector<8x128xf32>
    %cst_66 = arith.constant 0.000000e+00 : f32
    %cst_67 = arith.constant 1.000000e+00 : f32
    %148 = arith.subf %cst_66, %cst_67 : f32
    %149 = vector.broadcast %148 : f32 to vector<8x128xf32>
    %150 = arith.mulf %144, %149 : vector<8x128xf32>
    %cst_68 = arith.constant 0.000000e+00 : f32
    %cst_69 = arith.constant 1.000000e+00 : f32
    %151 = arith.subf %cst_68, %cst_69 : f32
    %152 = vector.broadcast %151 : f32 to vector<8x128xf32>
    %153 = arith.mulf %139, %152 : vector<8x128xf32>
    %154 = arith.minimumf %147, %150 : vector<8x128xf32>
    %155 = arith.maximumf %147, %150 : vector<8x128xf32>
    %156 = arith.maximumf %155, %153 : vector<8x128xf32>
    %157 = arith.minimumf %155, %153 : vector<8x128xf32>
    %158 = arith.maximumf %154, %157 : vector<8x128xf32>
    %159 = arith.minimumf %154, %153 : vector<8x128xf32>
    %160 = arith.subf %158, %156 : vector<8x128xf32>
    %161 = math.exp %160 : vector<8x128xf32>
    %cst_70 = arith.constant 1.000000e+00 : f32
    %162 = vector.broadcast %cst_70 : f32 to vector<8x128xf32>
    %163 = arith.addf %162, %161 : vector<8x128xf32>
    %164 = arith.subf %159, %156 : vector<8x128xf32>
    %165 = math.exp %164 : vector<8x128xf32>
    %166 = arith.addf %163, %165 : vector<8x128xf32>
    %cst_71 = arith.constant 0.000000e+00 : f32
    %cst_72 = arith.constant 1.000000e+00 : f32
    %167 = arith.subf %cst_71, %cst_72 : f32
    %168 = math.log %166 : vector<8x128xf32>
    %169 = arith.addf %168, %156 : vector<8x128xf32>
    %170 = vector.broadcast %167 : f32 to vector<8x128xf32>
    %171 = arith.mulf %170, %169 : vector<8x128xf32>
    %172 = arith.addf %142, %171 : vector<8x128xf32>
    %c8_i32_73 = arith.constant 8 : i32
    %173 = arith.subi %140, %c8_i32_73 : i32
    %c1_i32_74 = arith.constant 1 : i32
    %174 = arith.maxsi %c1_i32_74, %173 : i32
    %c1_i32_75 = arith.constant 1 : i32
    %175 = arith.subi %140, %c1_i32_75 : i32
    %c8_i32_76 = arith.constant 8 : i32
    %176 = arith.minsi %c8_i32_76, %175 : i32
    %177 = vector.broadcast %174 : i32 to vector<8x128xi32>
    %178 = arith.cmpi sge, %0, %177 : vector<8x128xi32>
    %179 = vector.broadcast %176 : i32 to vector<8x128xi32>
    %180 = arith.cmpi sle, %0, %179 : vector<8x128xi32>
    %181 = arith.andi %178, %180 : vector<8x128xi1>
    %cst_77 = arith.constant 0x7F800000 : f32
    %182 = vector.broadcast %cst_77 : f32 to vector<8x128xf32>
    %183 = arith.select %181, %172, %182 : vector<8x128xi1>, vector<8x128xf32>
    %c4_i32 = arith.constant 4 : i32
    %184 = arith.addi %7, %c4_i32 : i32
    %c4 = arith.constant 4 : index
    %c0_78 = arith.constant 0 : index
    %c0_79 = arith.constant 0 : index
    %185 = vector.load %arg2[%c4, %c0_78, %c0_79] : memref<8x8x128xf32, #tpu.memory_space<vmem>>, vector<1x8x128xf32>
    %186 = vector.shape_cast %185 : vector<1x8x128xf32> to vector<8x128xf32>
    %c1_i32_80 = arith.constant 1 : i32
    %187 = tpu.dynamic_rotate %139 by %c1_i32_80 dim 1 : vector<8x128xf32>, i32 -> vector<8x128xf32>
    %c1_i32_81 = arith.constant 1 : i32
    %188 = tpu.dynamic_rotate %183 by %c1_i32_81 dim 1 : vector<8x128xf32>, i32 -> vector<8x128xf32>
    %cst_82 = arith.constant 0.000000e+00 : f32
    %cst_83 = arith.constant 1.000000e+00 : f32
    %189 = arith.subf %cst_82, %cst_83 : f32
    %190 = vector.broadcast %189 : f32 to vector<8x128xf32>
    %191 = arith.mulf %187, %190 : vector<8x128xf32>
    %cst_84 = arith.constant 0.000000e+00 : f32
    %cst_85 = arith.constant 1.000000e+00 : f32
    %192 = arith.subf %cst_84, %cst_85 : f32
    %193 = vector.broadcast %192 : f32 to vector<8x128xf32>
    %194 = arith.mulf %188, %193 : vector<8x128xf32>
    %cst_86 = arith.constant 0.000000e+00 : f32
    %cst_87 = arith.constant 1.000000e+00 : f32
    %195 = arith.subf %cst_86, %cst_87 : f32
    %196 = vector.broadcast %195 : f32 to vector<8x128xf32>
    %197 = arith.mulf %183, %196 : vector<8x128xf32>
    %198 = arith.minimumf %191, %194 : vector<8x128xf32>
    %199 = arith.maximumf %191, %194 : vector<8x128xf32>
    %200 = arith.maximumf %199, %197 : vector<8x128xf32>
    %201 = arith.minimumf %199, %197 : vector<8x128xf32>
    %202 = arith.maximumf %198, %201 : vector<8x128xf32>
    %203 = arith.minimumf %198, %197 : vector<8x128xf32>
    %204 = arith.subf %202, %200 : vector<8x128xf32>
    %205 = math.exp %204 : vector<8x128xf32>
    %cst_88 = arith.constant 1.000000e+00 : f32
    %206 = vector.broadcast %cst_88 : f32 to vector<8x128xf32>
    %207 = arith.addf %206, %205 : vector<8x128xf32>
    %208 = arith.subf %203, %200 : vector<8x128xf32>
    %209 = math.exp %208 : vector<8x128xf32>
    %210 = arith.addf %207, %209 : vector<8x128xf32>
    %cst_89 = arith.constant 0.000000e+00 : f32
    %cst_90 = arith.constant 1.000000e+00 : f32
    %211 = arith.subf %cst_89, %cst_90 : f32
    %212 = math.log %210 : vector<8x128xf32>
    %213 = arith.addf %212, %200 : vector<8x128xf32>
    %214 = vector.broadcast %211 : f32 to vector<8x128xf32>
    %215 = arith.mulf %214, %213 : vector<8x128xf32>
    %216 = arith.addf %186, %215 : vector<8x128xf32>
    %c8_i32_91 = arith.constant 8 : i32
    %217 = arith.subi %184, %c8_i32_91 : i32
    %c1_i32_92 = arith.constant 1 : i32
    %218 = arith.maxsi %c1_i32_92, %217 : i32
    %c1_i32_93 = arith.constant 1 : i32
    %219 = arith.subi %184, %c1_i32_93 : i32
    %c8_i32_94 = arith.constant 8 : i32
    %220 = arith.minsi %c8_i32_94, %219 : i32
    %221 = vector.broadcast %218 : i32 to vector<8x128xi32>
    %222 = arith.cmpi sge, %0, %221 : vector<8x128xi32>
    %223 = vector.broadcast %220 : i32 to vector<8x128xi32>
    %224 = arith.cmpi sle, %0, %223 : vector<8x128xi32>
    %225 = arith.andi %222, %224 : vector<8x128xi1>
    %cst_95 = arith.constant 0x7F800000 : f32
    %226 = vector.broadcast %cst_95 : f32 to vector<8x128xf32>
    %227 = arith.select %225, %216, %226 : vector<8x128xi1>, vector<8x128xf32>
    %c5_i32 = arith.constant 5 : i32
    %228 = arith.addi %7, %c5_i32 : i32
    %c5 = arith.constant 5 : index
    %c0_96 = arith.constant 0 : index
    %c0_97 = arith.constant 0 : index
    %229 = vector.load %arg2[%c5, %c0_96, %c0_97] : memref<8x8x128xf32, #tpu.memory_space<vmem>>, vector<1x8x128xf32>
    %230 = vector.shape_cast %229 : vector<1x8x128xf32> to vector<8x128xf32>
    %c1_i32_98 = arith.constant 1 : i32
    %231 = tpu.dynamic_rotate %183 by %c1_i32_98 dim 1 : vector<8x128xf32>, i32 -> vector<8x128xf32>
    %c1_i32_99 = arith.constant 1 : i32
    %232 = tpu.dynamic_rotate %227 by %c1_i32_99 dim 1 : vector<8x128xf32>, i32 -> vector<8x128xf32>
    %cst_100 = arith.constant 0.000000e+00 : f32
    %cst_101 = arith.constant 1.000000e+00 : f32
    %233 = arith.subf %cst_100, %cst_101 : f32
    %234 = vector.broadcast %233 : f32 to vector<8x128xf32>
    %235 = arith.mulf %231, %234 : vector<8x128xf32>
    %cst_102 = arith.constant 0.000000e+00 : f32
    %cst_103 = arith.constant 1.000000e+00 : f32
    %236 = arith.subf %cst_102, %cst_103 : f32
    %237 = vector.broadcast %236 : f32 to vector<8x128xf32>
    %238 = arith.mulf %232, %237 : vector<8x128xf32>
    %cst_104 = arith.constant 0.000000e+00 : f32
    %cst_105 = arith.constant 1.000000e+00 : f32
    %239 = arith.subf %cst_104, %cst_105 : f32
    %240 = vector.broadcast %239 : f32 to vector<8x128xf32>
    %241 = arith.mulf %227, %240 : vector<8x128xf32>
    %242 = arith.minimumf %235, %238 : vector<8x128xf32>
    %243 = arith.maximumf %235, %238 : vector<8x128xf32>
    %244 = arith.maximumf %243, %241 : vector<8x128xf32>
    %245 = arith.minimumf %243, %241 : vector<8x128xf32>
    %246 = arith.maximumf %242, %245 : vector<8x128xf32>
    %247 = arith.minimumf %242, %241 : vector<8x128xf32>
    %248 = arith.subf %246, %244 : vector<8x128xf32>
    %249 = math.exp %248 : vector<8x128xf32>
    %cst_106 = arith.constant 1.000000e+00 : f32
    %250 = vector.broadcast %cst_106 : f32 to vector<8x128xf32>
    %251 = arith.addf %250, %249 : vector<8x128xf32>
    %252 = arith.subf %247, %244 : vector<8x128xf32>
    %253 = math.exp %252 : vector<8x128xf32>
    %254 = arith.addf %251, %253 : vector<8x128xf32>
    %cst_107 = arith.constant 0.000000e+00 : f32
    %cst_108 = arith.constant 1.000000e+00 : f32
    %255 = arith.subf %cst_107, %cst_108 : f32
    %256 = math.log %254 : vector<8x128xf32>
    %257 = arith.addf %256, %244 : vector<8x128xf32>
    %258 = vector.broadcast %255 : f32 to vector<8x128xf32>
    %259 = arith.mulf %258, %257 : vector<8x128xf32>
    %260 = arith.addf %230, %259 : vector<8x128xf32>
    %c8_i32_109 = arith.constant 8 : i32
    %261 = arith.subi %228, %c8_i32_109 : i32
    %c1_i32_110 = arith.constant 1 : i32
    %262 = arith.maxsi %c1_i32_110, %261 : i32
    %c1_i32_111 = arith.constant 1 : i32
    %263 = arith.subi %228, %c1_i32_111 : i32
    %c8_i32_112 = arith.constant 8 : i32
    %264 = arith.minsi %c8_i32_112, %263 : i32
    %265 = vector.broadcast %262 : i32 to vector<8x128xi32>
    %266 = arith.cmpi sge, %0, %265 : vector<8x128xi32>
    %267 = vector.broadcast %264 : i32 to vector<8x128xi32>
    %268 = arith.cmpi sle, %0, %267 : vector<8x128xi32>
    %269 = arith.andi %266, %268 : vector<8x128xi1>
    %cst_113 = arith.constant 0x7F800000 : f32
    %270 = vector.broadcast %cst_113 : f32 to vector<8x128xf32>
    %271 = arith.select %269, %260, %270 : vector<8x128xi1>, vector<8x128xf32>
    %c6_i32 = arith.constant 6 : i32
    %272 = arith.addi %7, %c6_i32 : i32
    %c6 = arith.constant 6 : index
    %c0_114 = arith.constant 0 : index
    %c0_115 = arith.constant 0 : index
    %273 = vector.load %arg2[%c6, %c0_114, %c0_115] : memref<8x8x128xf32, #tpu.memory_space<vmem>>, vector<1x8x128xf32>
    %274 = vector.shape_cast %273 : vector<1x8x128xf32> to vector<8x128xf32>
    %c1_i32_116 = arith.constant 1 : i32
    %275 = tpu.dynamic_rotate %227 by %c1_i32_116 dim 1 : vector<8x128xf32>, i32 -> vector<8x128xf32>
    %c1_i32_117 = arith.constant 1 : i32
    %276 = tpu.dynamic_rotate %271 by %c1_i32_117 dim 1 : vector<8x128xf32>, i32 -> vector<8x128xf32>
    %cst_118 = arith.constant 0.000000e+00 : f32
    %cst_119 = arith.constant 1.000000e+00 : f32
    %277 = arith.subf %cst_118, %cst_119 : f32
    %278 = vector.broadcast %277 : f32 to vector<8x128xf32>
    %279 = arith.mulf %275, %278 : vector<8x128xf32>
    %cst_120 = arith.constant 0.000000e+00 : f32
    %cst_121 = arith.constant 1.000000e+00 : f32
    %280 = arith.subf %cst_120, %cst_121 : f32
    %281 = vector.broadcast %280 : f32 to vector<8x128xf32>
    %282 = arith.mulf %276, %281 : vector<8x128xf32>
    %cst_122 = arith.constant 0.000000e+00 : f32
    %cst_123 = arith.constant 1.000000e+00 : f32
    %283 = arith.subf %cst_122, %cst_123 : f32
    %284 = vector.broadcast %283 : f32 to vector<8x128xf32>
    %285 = arith.mulf %271, %284 : vector<8x128xf32>
    %286 = arith.minimumf %279, %282 : vector<8x128xf32>
    %287 = arith.maximumf %279, %282 : vector<8x128xf32>
    %288 = arith.maximumf %287, %285 : vector<8x128xf32>
    %289 = arith.minimumf %287, %285 : vector<8x128xf32>
    %290 = arith.maximumf %286, %289 : vector<8x128xf32>
    %291 = arith.minimumf %286, %285 : vector<8x128xf32>
    %292 = arith.subf %290, %288 : vector<8x128xf32>
    %293 = math.exp %292 : vector<8x128xf32>
    %cst_124 = arith.constant 1.000000e+00 : f32
    %294 = vector.broadcast %cst_124 : f32 to vector<8x128xf32>
    %295 = arith.addf %294, %293 : vector<8x128xf32>
    %296 = arith.subf %291, %288 : vector<8x128xf32>
    %297 = math.exp %296 : vector<8x128xf32>
    %298 = arith.addf %295, %297 : vector<8x128xf32>
    %cst_125 = arith.constant 0.000000e+00 : f32
    %cst_126 = arith.constant 1.000000e+00 : f32
    %299 = arith.subf %cst_125, %cst_126 : f32
    %300 = math.log %298 : vector<8x128xf32>
    %301 = arith.addf %300, %288 : vector<8x128xf32>
    %302 = vector.broadcast %299 : f32 to vector<8x128xf32>
    %303 = arith.mulf %302, %301 : vector<8x128xf32>
    %304 = arith.addf %274, %303 : vector<8x128xf32>
    %c8_i32_127 = arith.constant 8 : i32
    %305 = arith.subi %272, %c8_i32_127 : i32
    %c1_i32_128 = arith.constant 1 : i32
    %306 = arith.maxsi %c1_i32_128, %305 : i32
    %c1_i32_129 = arith.constant 1 : i32
    %307 = arith.subi %272, %c1_i32_129 : i32
    %c8_i32_130 = arith.constant 8 : i32
    %308 = arith.minsi %c8_i32_130, %307 : i32
    %309 = vector.broadcast %306 : i32 to vector<8x128xi32>
    %310 = arith.cmpi sge, %0, %309 : vector<8x128xi32>
    %311 = vector.broadcast %308 : i32 to vector<8x128xi32>
    %312 = arith.cmpi sle, %0, %311 : vector<8x128xi32>
    %313 = arith.andi %310, %312 : vector<8x128xi1>
    %cst_131 = arith.constant 0x7F800000 : f32
    %314 = vector.broadcast %cst_131 : f32 to vector<8x128xf32>
    %315 = arith.select %313, %304, %314 : vector<8x128xi1>, vector<8x128xf32>
    %c1_i32_132 = arith.constant 1 : i32
    %316 = arith.cmpi eq, %arg1, %c1_i32_132 : i32
    %317 = arith.extui %316 : i1 to i32
    %c0_i32_133 = arith.constant 0 : i32
    %318 = arith.cmpi ne, %317, %c0_i32_133 : i32
    scf.if %318 {
      %c0_156 = arith.constant 0 : index
      %c0_157 = arith.constant 0 : index
      %365 = vector.load %arg3[%c0_156, %c0_157] : memref<8x128xf32, #tpu.memory_space<vmem>>, vector<8x128xf32>
      tpu.vector_store %arg3[%c0_156, %c0_157], %315 {strides = array<i32>} : memref<8x128xf32, #tpu.memory_space<vmem>>, vector<8x128xf32>,
    } else {
    }
    %c7_i32 = arith.constant 7 : i32
    %319 = arith.addi %7, %c7_i32 : i32
    %c7 = arith.constant 7 : index
    %c0_134 = arith.constant 0 : index
    %c0_135 = arith.constant 0 : index
    %320 = vector.load %arg2[%c7, %c0_134, %c0_135] : memref<8x8x128xf32, #tpu.memory_space<vmem>>, vector<1x8x128xf32>
    %321 = vector.shape_cast %320 : vector<1x8x128xf32> to vector<8x128xf32>
    %c1_i32_136 = arith.constant 1 : i32
    %322 = tpu.dynamic_rotate %271 by %c1_i32_136 dim 1 : vector<8x128xf32>, i32 -> vector<8x128xf32>
    %c1_i32_137 = arith.constant 1 : i32
    %323 = tpu.dynamic_rotate %315 by %c1_i32_137 dim 1 : vector<8x128xf32>, i32 -> vector<8x128xf32>
    %cst_138 = arith.constant 0.000000e+00 : f32
    %cst_139 = arith.constant 1.000000e+00 : f32
    %324 = arith.subf %cst_138, %cst_139 : f32
    %325 = vector.broadcast %324 : f32 to vector<8x128xf32>
    %326 = arith.mulf %322, %325 : vector<8x128xf32>
    %cst_140 = arith.constant 0.000000e+00 : f32
    %cst_141 = arith.constant 1.000000e+00 : f32
    %327 = arith.subf %cst_140, %cst_141 : f32
    %328 = vector.broadcast %327 : f32 to vector<8x128xf32>
    %329 = arith.mulf %323, %328 : vector<8x128xf32>
    %cst_142 = arith.constant 0.000000e+00 : f32
    %cst_143 = arith.constant 1.000000e+00 : f32
    %330 = arith.subf %cst_142, %cst_143 : f32
    %331 = vector.broadcast %330 : f32 to vector<8x128xf32>
    %332 = arith.mulf %315, %331 : vector<8x128xf32>
    %333 = arith.minimumf %326, %329 : vector<8x128xf32>
    %334 = arith.maximumf %326, %329 : vector<8x128xf32>
    %335 = arith.maximumf %334, %332 : vector<8x128xf32>
    %336 = arith.minimumf %334, %332 : vector<8x128xf32>
    %337 = arith.maximumf %333, %336 : vector<8x128xf32>
    %338 = arith.minimumf %333, %332 : vector<8x128xf32>
    %339 = arith.subf %337, %335 : vector<8x128xf32>
    %340 = math.exp %339 : vector<8x128xf32>
    %cst_144 = arith.constant 1.000000e+00 : f32
    %341 = vector.broadcast %cst_144 : f32 to vector<8x128xf32>
    %342 = arith.addf %341, %340 : vector<8x128xf32>
    %343 = arith.subf %338, %335 : vector<8x128xf32>
    %344 = math.exp %343 : vector<8x128xf32>
    %345 = arith.addf %342, %344 : vector<8x128xf32>
    %cst_145 = arith.constant 0.000000e+00 : f32
    %cst_146 = arith.constant 1.000000e+00 : f32
    %346 = arith.subf %cst_145, %cst_146 : f32
    %347 = math.log %345 : vector<8x128xf32>
    %348 = arith.addf %347, %335 : vector<8x128xf32>
    %349 = vector.broadcast %346 : f32 to vector<8x128xf32>
    %350 = arith.mulf %349, %348 : vector<8x128xf32>
    %351 = arith.addf %321, %350 : vector<8x128xf32>
    %c8_i32_147 = arith.constant 8 : i32
    %352 = arith.subi %319, %c8_i32_147 : i32
    %c1_i32_148 = arith.constant 1 : i32
    %353 = arith.maxsi %c1_i32_148, %352 : i32
    %c1_i32_149 = arith.constant 1 : i32
    %354 = arith.subi %319, %c1_i32_149 : i32
    %c8_i32_150 = arith.constant 8 : i32
    %355 = arith.minsi %c8_i32_150, %354 : i32
    %356 = vector.broadcast %353 : i32 to vector<8x128xi32>
    %357 = arith.cmpi sge, %0, %356 : vector<8x128xi32>
    %358 = vector.broadcast %355 : i32 to vector<8x128xi32>
    %359 = arith.cmpi sle, %0, %358 : vector<8x128xi32>
    %360 = arith.andi %357, %359 : vector<8x128xi1>
    %cst_151 = arith.constant 0x7F800000 : f32
    %361 = vector.broadcast %cst_151 : f32 to vector<8x128xf32>
    %362 = arith.select %360, %351, %361 : vector<8x128xi1>, vector<8x128xf32>
    %c0_152 = arith.constant 0 : index
    %c0_153 = arith.constant 0 : index
    %363 = vector.load %arg5[%c0_152, %c0_153] : memref<8x128xf32, #tpu.memory_space<vmem>>, vector<8x128xf32>
    tpu.vector_store %arg5[%c0_152, %c0_153], %315 {strides = array<i32>} : memref<8x128xf32, #tpu.memory_space<vmem>>, vector<8x128xf32>,
    %c0_154 = arith.constant 0 : index
    %c0_155 = arith.constant 0 : index
    %364 = vector.load %arg4[%c0_154, %c0_155] : memref<8x128xf32, #tpu.memory_space<vmem>>, vector<8x128xf32>
    tpu.vector_store %arg4[%c0_154, %c0_155], %362 {strides = array<i32>} : memref<8x128xf32, #tpu.memory_space<vmem>>, vector<8x128xf32>,
    return
  }
  func.func @transform_0(%arg0: i32, %arg1: i32) -> (i32, i32, i32) {
    %c0_i32 = arith.constant 0 : i32
    %c0_i32_0 = arith.constant 0 : i32
    return %arg1, %arg0, %c0_i32 : i32, i32, i32
  }
  func.func @transform_1(%arg0: i32, %arg1: i32) -> (i32, i32) {
    %c0_i32 = arith.constant 0 : i32
    %c0_i32_0 = arith.constant 0 : i32
    return %arg0, %c0_i32 : i32, i32
  }
}

</mosaic_0001>

<bundles_post_ra>
// kernel: tpu_custom_call.1
= control target key start
LH: loop header
LB: loop body
LE: loop exit
PB: predicated region body
PF: predicated region fallthrough
CT: control target
= control target key end

     0   :  { %6 = vsyncpa [#allocation5], 0  ;;  %s968_s0 = inlined_call_operand.hbm [shape: f32[16,8,128], index: 0, kind: input, shape index: {}]   ;;  %s969_s1 = inlined_call_operand.hbm [shape: f32[8,128], index: 1, kind: output, shape index: {}]  }
   0x1   :  { %8 = vsyncpa [#allocation5 + $0x1], 0 }
   0x2   :  { %9 = vsyncpa [#allocation6], 0  ;;  %s793_s6 = smov 0   ;;  %s795_s7 = smov 0  }
   0x3   :  { %s797_s8 = smov 0   ;;  %s799_s9 = smov 0  }
   0x4   :  { %s801_s10 = smov 0   ;;  %s803_s11 = smov 0  }
   0x5 LB: > { %s532_s12 = sadd.s32 4294967295, %s775_s11   ;;  %s24_s13 = sadd.s32 1, %s771_s10  ;;  %s775_s11 = sphi %s803_s11, %s15_s11   ;;  %s771_s10 = sphi %s801_s10, %s978_s10   ;;  %s767_s9 = sphi %s799_s9, %s977_s9   ;;  %s763_s8 = sphi %s797_s8, %s976_s8   ;;  %s759_s7 = sphi %s795_s7, %s975_s7   ;;  %s755_s6 = sphi %s793_s6, %s974_s6  }
   0x6   : > { %p25_p0 = scmp.ge.s32.totalorder %s24_s13, 2  ;;  %s36_s14 = sadd.s32 1, %s763_s8 }
   0x7   : > { %p43_p1 = scmp.ne.s32.totalorder %s763_s8, %s759_s7  ;;  %p44_p2 = scmp.eq.s32.totalorder %s775_s11, 0 }
   0x8   : > { %s980_s13 = smov (%p25_p0, %s24_s13), 0  ;;  %p49_p4 = scmp.ne.s32.totalorder %s759_s7, %s755_s6 }
   0x9   : > { %p829_p3 = por %p44_p2, %p43_p1  ;;  %s31_s16 = ssub.s32 %s771_s10, %s980_s13 }
   0xa   : > { %p50_p5 = scmp.eq.s32.totalorder %s532_s12, 0  ;;  %p34_p6 = scmp.eq.s32.totalorder %s31_s16, 0 }
   0xb   : > { %p565_p8 = scmp.lt.s32.totalorder %s775_s11, 2  ;;  %s99_s19 = sand.u32 1, %s763_s8  }
   0xc   : > { %p838_p7 = por %p50_p5, %p49_p4  ;;  %s554_s20 = sshll.u32 %s771_s10, 10 }
   0xd   : > { %s844_s18 = scalar_select %p34_p6, %s763_s8, %s36_s14  }
   0xe   : > { %s535_s21 = sshll.u32 %s99_s19, 6  ;;  %s110_s24 = scalar_lea.hbm %s968_s0, %s554_s20 }
   0xf   : > { %s103_s25 = scalar_lea.vmem [#allocation4], %s535_s21  ;;  %p853_p9 = pnand %p565_p8, %p829_p3 }
  0x10   : > { %s111_s26 = sshll.u32 %s103_s25, 4  ;;  %s100_s28 = scalar_lea.sflag [#allocation5], %s99_s19  ;;  %s112_s26 = int_to_ptr.vmem [resolvable:$true] %s111_s26 }
  0x11   : > { %p671_p10 = pneg %p853_p9  ;;  %s682_s29 = scalar_lea.vmem %s112_s26, 1024 }
  0x12   : > { %p683_p11 = scmp.ne.s32.totalorder %s112_s26, %s682_s29  ;;  %s777_s30 = smov [#allocation4]  }
  0x13   : > { %s687_s2 = sshll.u32 %s777_s30, 4  ;;  %s688_s2 = int_to_ptr.vmem [resolvable:$false] %s687_s2 }
  0x14   : > { %p685_p12 = pnand %p683_p11, %p671_p10  ;;  %s689_s3 = scalar_lea.vmem %s688_s2, 2048 }
  0x15   : > { %p690_p0 = scmp.lt.s32.totalorder %s112_s26, %s688_s2  ;;  %p691_p1 = scmp.lt.s32.totalorder %s689_s3, %s682_s29 }
  0x16   : > { %p686_p13 = pneg %p685_p12 }
  0x17   : > { %p692_p2 = por %p691_p1, %p690_p0 }
  0x19   : > { %p693_p3 = pnand %p692_p2, %p686_p13 }
  0x1b   : > { %696 = shalt.err (!%p693_p3)
}
  0x1c   : > { %s778_s4 = smov 128   ;;  %s779_s5 = smov 8  }
  0x1d   : > { %564 = dma.hbm_to_vmem [thread:$0]  (!%p853_p9), %s110_s24, 1024, %s112_s26, %s100_s28, %s778_s4, %s778_s4, %s779_s5  }
  0x1e   : > { %p538_p4 = scmp.ge.s32.totalorder %s775_s11, 1  ;;  %p119_p5 = scmp.lt.s32.totalorder %s775_s11, 3 }
  0x20   : > { %p120_p6 = pnand %p538_p4, %p119_p5 }
  0x21   : > { %s125_s6 = sand.u32 (!%p120_p6), 1, %s759_s7  }
  0x22   : > { %123 = sbr.rel (%p120_p6) target bundleno = 1409 (0x581), region = 24  ;;  %s539_s14 = sshll.u32 (!%p120_p6), %s125_s6, 6 }
  0x23   : > { %s126_s15 = scalar_lea.sflag (!%p120_p6), [#allocation5], %s125_s6  ;;  %s864_s16 = scalar_lea.vmem (!%p120_p6), [#allocation4], %s539_s14 }
  0x27   : > { %746 = dma.done.wait (%p838_p7), %s126_s15, 1024  }
  0x28   : > { %748 = vsyncadd (%p838_p7), %s126_s15, 4294966272  ;;  %v144_v0 = vlaneseq  ;;  %p540_p8 = scmp.ne.s32.totalorder %s767_s9, 0 }
  0x2a   : > { %v870_v1 = vand.u32 127, %v144_v0  ;;  %149 = sbr.rel (%p540_p8) target bundleno = 50 (0x32), region = 32 }
  0x2f   : > { %vm150_vm0 = vcmp.eq.s32.totalorder %v870_v1, 0  ;;  %v780_v2 = vmov inf  }
  0x30   : > { %v151_v3 = vsel %vm150_vm0, 0.0, %v780_v2  ;;  %153 = vst [vmem:[#allocation2] sm:$0xff] %v780_v2 }
  0x31   : > { %152 = vst [vmem:[#allocation3] sm:$0xff] %v151_v3 }
  0x32 PF: > { %s781_s19 = smov 1   ;;  %s877_s17 = sshll.u32 %s767_s9, 3  ;;  %v158_v30 = vld [vmem:[%s864_s16] sm:$0xff]  ;;  %v542_v56 = vld [vmem:[%s864_s16 + $0x8] sm:$0xff] }
  0x33   : > { %s185_s20 = sadd.s32 4294967290, %s877_s17  ;;  %s881_s21 = sadd.s32 1, %s877_s17 }
  0x34   : > { %p186_p7 = scmp.gt.s32.totalorder %s185_s20, 1  ;;  %p189_p9 = scmp.lt.s32.totalorder %s881_s21, 8 }
  0x35   : > { %s222_s23 = sadd.s32 4294967291, %s877_s17  ;;  %s157_s24 = sadd.s32 2, %s877_s17 }
  0x36   : > { %s982_s20 = smov (!%p186_p7, %s185_s20), 1  ;;  %p223_p10 = scmp.gt.s32.totalorder %s222_s23, 1 }
  0x37   : > { %v155_v5 = vld [vmem:[#allocation2] sm:$0xff]  ;;  %s190_s22 = scalar_select %p189_p9, %s881_s21, 8  ;;  %v191_v26 = vstv %s982_s20 }
  0x38   : > { %v154_v4 = vld [vmem:[#allocation3] sm:$0xff]  ;;  %v165_v8 = vmul.f32 -1.0, %v155_v5  ;;  %vm192_vm1 = vcmp.ge.s32.totalorder %v870_v1, %v191_v26  ;;  %p225_p11 = scmp.lt.s32.totalorder %s157_s24, 8  ;;  %s984_s23 = smov (!%p223_p10, %s222_s23), 1 }
  0x39   : > { %159 = vrot.lane.b32.xlu0 %v154_v4, %s781_s19  ;;  %v193_v27 = vstv %s190_s22  ;;  %v227_v52 = vstv %s984_s23  ;;  %s258_s25 = sadd.s32 4294967292, %s877_s17  ;;  %s261_s26 = sadd.s32 3, %s877_s17 }
  0x3a   : > { %vm194_vm2 = vcmp.le.s32.totalorder %v870_v1, %v193_v27  ;;  %s986_s24 = smov (!%p225_p11, %s157_s24), 8  ;;  %vm228_vm4 = vcmp.ge.s32.totalorder %v870_v1, %v227_v52  ;;  %p259_p12 = scmp.gt.s32.totalorder %s258_s25, 1 }
  0x3b   : > { %vm195_vm3 = vmand %vm192_vm1, %vm194_vm2  ;;  %v229_v53 = vstv %s986_s24  ;;  %p262_p13 = scmp.lt.s32.totalorder %s261_s26, 8  ;;  %s295_s27 = sadd.s32 4294967293, %s877_s17 }
  0x3c   : > { %vm230_vm5 = vcmp.le.s32.totalorder %v870_v1, %v229_v53  ;;  %s988_s25 = smov (!%p259_p12, %s258_s25), 1  ;;  %s298_s28 = sadd.s32 4, %s877_s17 }
  0x3d   : > { %161 = vrot.lane.b32.xlu0 %v155_v5, %s781_s19  ;;  %vm231_vm6 = vmand %vm228_vm4, %vm230_vm5  ;;  %s990_s26 = smov (!%p262_p13, %s261_s26), 8  ;;  %p296_p0 = scmp.gt.s32.totalorder %s295_s27, 1 }
  0x3e   : > { %p299_p1 = scmp.lt.s32.totalorder %s298_s28, 8  ;;  %s332_s29 = sadd.s32 4294967294, %s877_s17 }
  0x3f   : > { %s992_s27 = smov (!%p296_p0, %s295_s27), 1  ;;  %s335_s30 = sadd.s32 5, %s877_s17 }
  0x40   : > { %s994_s28 = smov (!%p299_p1, %s298_s28), 8  ;;  %p333_p2 = scmp.gt.s32.totalorder %s332_s29, 1 }
  0x41   : > { %p336_p3 = scmp.lt.s32.totalorder %s335_s30, 8  ;;  %s369_s2 = sadd.s32 4294967295, %s877_s17 }
  0x42   : > { %s996_s29 = smov (!%p333_p2, %s332_s29), 1  ;;  %s372_s3 = sadd.s32 6, %s877_s17 }
  0x43   : > { %s998_s30 = smov (!%p336_p3, %s335_s30), 8  ;;  %p370_p4 = scmp.gt.s32.totalorder %s369_s2, 1 }
  0x44   : > { %p373_p5 = scmp.lt.s32.totalorder %s372_s3, 8  ;;  %s408_s4 = sadd.s32 7, %s877_s17 }
  0x45   : > { %s1000_s2 = smov (!%p370_p4, %s369_s2), 1  ;;  %p406_p6 = scmp.gt.s32.totalorder %s877_s17, 1 }
  0x46   : > { %s1002_s3 = smov (!%p373_p5, %s372_s3), 8  ;;  %p409_p8 = scmp.lt.s32.totalorder %s408_s4, 8 }
  0x47   : > { %s407_s5 = scalar_select %p406_p6, %s877_s17, 1 }
  0x48   : > { %s1004_s4 = smov (!%p409_p8, %s408_s4), 8  ;;  %p548_p7 = scmp.ne.s32.totalorder %s767_s9, 1 }
  0xab   : > { %v160_v6 = vpop.permute.xlu0 %159 }
  0xac   : > { %v163_v9 = vmul.f32 -1.0, %v160_v6 }
  0xaf   : > { %v162_v7 = vpop.permute.xlu0 %161 }
  0xb0   : > { %v164_v10 = vmul.f32 -1.0, %v162_v7 }
  0xb2   : > { %v166_v11 = vmin.f32 %v163_v9, %v164_v10  ;;  %v167_v12 = vmax.f32 %v163_v9, %v164_v10 }
  0xb4   : > { %v169_v13 = vmin.f32 %v167_v12, %v165_v8  ;;  %v171_v14 = vmin.f32 %v166_v11, %v165_v8  ;;  %v168_v15 = vmax.f32 %v167_v12, %v165_v8 }
  0xb6   : > { %v170_v16 = vmax.f32 %v166_v11, %v169_v13  ;;  %v176_v17 = vsub.f32 %v171_v14, %v168_v15 }
  0xb8   : > { %v172_v18 = vsub.f32 %v170_v16, %v168_v15  ;;  %v177_v20 = vmul.f32 1.442695, %v176_v17  ;;  %v266_v16 = vstv %s990_s26 }
  0xb9   : > { %vm267_vm8 = vcmp.le.s32.totalorder %v870_v1, %v266_v16 }
  0xba   : > { %v173_v19 = vmul.f32 1.442695, %v172_v18 }
  0xbc   : > { %621 = vpow2.f32 %v173_v19  ;;  %v543_v19 = vld [vmem:[%s864_s16 + $0x10] sm:$0xff] }
  0xbd   : > { %623 = vpow2.f32 %v177_v20 }
  0xc9   : > { %v622_v21 = vpop.eup %621 }
  0xca   : > { %v175_v22 = vadd.f32 1.0, %v622_v21  ;;  %v624_v23 = vpop.eup %623 }
  0xcc   : > { %v179_v24 = vadd.f32 %v624_v23, %v175_v22 }
  0xce   : > { %625 = vlog2.f32 %v179_v24 }
  0xdb   : > { %v626_v25 = vpop.eup %625 }
  0xdc   : > { %v181_v28 = vmul.f32 0.6931472, %v626_v25 }
  0xde   : > { %v182_v29 = vadd.f32 %v181_v28, %v168_v15  ;;  %v264_v15 = vstv %s988_s25 }
  0xdf   : > { %vm265_vm7 = vcmp.ge.s32.totalorder %v870_v1, %v264_v15 }
  0xe0   : > { %v183_v31 = vmul.f32 -1.0, %v182_v29  ;;  %vm268_vm9 = vmand %vm265_vm7, %vm267_vm8 }
  0xe2   : > { %v184_v32 = vadd.f32 %v183_v31, %v158_v30 }
  0xe4   : > { %v196_v33 = vsel %vm195_vm3, %v184_v32, inf }
  0xe5   : > { %199 = vrot.lane.b32.xlu1 %v196_v33, %s781_s19  ;;  %v202_v36 = vmul.f32 -1.0, %v196_v33 }
 0x157   : > { %v200_v34 = vpop.permute.xlu1 %199 }
 0x158   : > { %v201_v35 = vmul.f32 -1.0, %v200_v34 }
 0x15a   : > { %v203_v37 = vmin.f32 %v164_v10, %v201_v35  ;;  %v204_v38 = vmax.f32 %v164_v10, %v201_v35 }
 0x15c   : > { %v205_v39 = vmax.f32 %v204_v38, %v202_v36  ;;  %v206_v40 = vmin.f32 %v204_v38, %v202_v36  ;;  %v208_v41 = vmin.f32 %v203_v37, %v202_v36 }
 0x15e   : > { %v207_v42 = vmax.f32 %v203_v37, %v206_v40  ;;  %v213_v43 = vsub.f32 %v208_v41, %v205_v39  ;;  %v301_v41 = vstv %s992_s27 }
 0x15f   : > { %vm302_vm10 = vcmp.ge.s32.totalorder %v870_v1, %v301_v41 }
 0x160   : > { %v209_v44 = vsub.f32 %v207_v42, %v205_v39  ;;  %v214_v46 = vmul.f32 1.442695, %v213_v43  ;;  %v303_v42 = vstv %s994_s28 }
 0x161   : > { %vm304_vm11 = vcmp.le.s32.totalorder %v870_v1, %v303_v42 }
 0x162   : > { %v210_v45 = vmul.f32 1.442695, %v209_v44  ;;  %vm305_vm12 = vmand %vm302_vm10, %vm304_vm11 }
 0x164   : > { %627 = vpow2.f32 %v210_v45  ;;  %v544_v45 = vld [vmem:[%s864_s16 + $0x18] sm:$0xff] }
 0x165   : > { %629 = vpow2.f32 %v214_v46 }
 0x171   : > { %v628_v47 = vpop.eup %627 }
 0x172   : > { %v212_v48 = vadd.f32 1.0, %v628_v47  ;;  %v630_v49 = vpop.eup %629 }
 0x174   : > { %v216_v50 = vadd.f32 %v630_v49, %v212_v48 }
 0x176   : > { %631 = vlog2.f32 %v216_v50 }
 0x183   : > { %v632_v51 = vpop.eup %631 }
 0x184   : > { %v218_v54 = vmul.f32 0.6931472, %v632_v51 }
 0x186   : > { %v219_v55 = vadd.f32 %v218_v54, %v205_v39 }
 0x188   : > { %v220_v57 = vmul.f32 -1.0, %v219_v55 }
 0x18a   : > { %v221_v58 = vadd.f32 %v542_v56, %v220_v57 }
 0x18c   : > { %v232_v59 = vsel %vm231_vm6, %v221_v58, inf }
 0x18d   : > { %235 = vrot.lane.b32.xlu1 %v232_v59, %s781_s19  ;;  %v238_v62 = vmul.f32 -1.0, %v232_v59 }
 0x1ff   : > { %v236_v60 = vpop.permute.xlu1 %235 }
 0x200   : > { %v237_v61 = vmul.f32 -1.0, %v236_v60 }
 0x202   : > { %v239_v63 = vmin.f32 %v201_v35, %v237_v61  ;;  %v240_v0 = vmax.f32 %v201_v35, %v237_v61 }
 0x204   : > { %v241_v2 = vmax.f32 %v240_v0, %v238_v62  ;;  %v242_v3 = vmin.f32 %v240_v0, %v238_v62  ;;  %v244_v4 = vmin.f32 %v239_v63, %v238_v62 }
 0x206   : > { %v243_v5 = vmax.f32 %v239_v63, %v242_v3  ;;  %v249_v6 = vsub.f32 %v244_v4, %v241_v2  ;;  %v338_v4 = vstv %s996_s29 }
 0x207   : > { %vm339_vm13 = vcmp.ge.s32.totalorder %v870_v1, %v338_v4 }
 0x208   : > { %v245_v7 = vsub.f32 %v243_v5, %v241_v2  ;;  %v250_v9 = vmul.f32 1.442695, %v249_v6  ;;  %v340_v5 = vstv %s998_s30 }
 0x209   : > { %vm341_vm14 = vcmp.le.s32.totalorder %v870_v1, %v340_v5 }
 0x20a   : > { %v246_v8 = vmul.f32 1.442695, %v245_v7  ;;  %vm342_vm15 = vmand %vm339_vm13, %vm341_vm14 }
 0x20c   : > { %633 = vpow2.f32 %v246_v8  ;;  %v545_v8 = vld [vmem:[%s864_s16 + $0x20] sm:$0xff] }
 0x20d   : > { %635 = vpow2.f32 %v250_v9 }
 0x219   : > { %v634_v10 = vpop.eup %633 }
 0x21a   : > { %v248_v11 = vadd.f32 1.0, %v634_v10  ;;  %v636_v12 = vpop.eup %635 }
 0x21c   : > { %v252_v13 = vadd.f32 %v636_v12, %v248_v11 }
 0x21e   : > { %637 = vlog2.f32 %v252_v13 }
 0x22b   : > { %v638_v14 = vpop.eup %637 }
 0x22c   : > { %v254_v17 = vmul.f32 0.6931472, %v638_v14 }
 0x22e   : > { %v255_v18 = vadd.f32 %v254_v17, %v241_v2 }
 0x230   : > { %v256_v20 = vmul.f32 -1.0, %v255_v18 }
 0x232   : > { %v257_v21 = vadd.f32 %v543_v19, %v256_v20 }
 0x234   : > { %v269_v22 = vsel %vm268_vm9, %v257_v21, inf }
 0x235   : > { %272 = vrot.lane.b32.xlu0 %v269_v22, %s781_s19  ;;  %v275_v25 = vmul.f32 -1.0, %v269_v22 }
 0x2a7   : > { %v273_v23 = vpop.permute.xlu0 %272 }
 0x2a8   : > { %v274_v24 = vmul.f32 -1.0, %v273_v23 }
 0x2aa   : > { %v276_v26 = vmin.f32 %v237_v61, %v274_v24  ;;  %v277_v27 = vmax.f32 %v237_v61, %v274_v24 }
 0x2ac   : > { %v278_v28 = vmax.f32 %v277_v27, %v275_v25  ;;  %v279_v29 = vmin.f32 %v277_v27, %v275_v25  ;;  %v281_v30 = vmin.f32 %v276_v26, %v275_v25 }
 0x2ae   : > { %v280_v31 = vmax.f32 %v276_v26, %v279_v29  ;;  %v286_v32 = vsub.f32 %v281_v30, %v278_v28  ;;  %v375_v30 = vstv %s1000_s2 }
 0x2af   : > { %vm376_vm0 = vcmp.ge.s32.totalorder %v870_v1, %v375_v30 }
 0x2b0   : > { %v282_v33 = vsub.f32 %v280_v31, %v278_v28  ;;  %v287_v35 = vmul.f32 1.442695, %v286_v32  ;;  %v377_v31 = vstv %s1002_s3 }
 0x2b1   : > { %vm378_vm1 = vcmp.le.s32.totalorder %v870_v1, %v377_v31 }
 0x2b2   : > { %v283_v34 = vmul.f32 1.442695, %v282_v33  ;;  %vm379_vm2 = vmand %vm376_vm0, %vm378_vm1 }
 0x2b4   : > { %639 = vpow2.f32 %v283_v34  ;;  %v546_v34 = vld [vmem:[%s864_s16 + $0x28] sm:$0xff] }
 0x2b5   : > { %641 = vpow2.f32 %v287_v35 }
 0x2c1   : > { %v640_v36 = vpop.eup %639 }
 0x2c2   : > { %v285_v37 = vadd.f32 1.0, %v640_v36  ;;  %v642_v38 = vpop.eup %641 }
 0x2c4   : > { %v289_v39 = vadd.f32 %v642_v38, %v285_v37 }
 0x2c6   : > { %643 = vlog2.f32 %v289_v39 }
 0x2d3   : > { %v644_v40 = vpop.eup %643 }
 0x2d4   : > { %v291_v43 = vmul.f32 0.6931472, %v644_v40 }
 0x2d6   : > { %v292_v44 = vadd.f32 %v291_v43, %v278_v28 }
 0x2d8   : > { %v293_v46 = vmul.f32 -1.0, %v292_v44 }
 0x2da   : > { %v294_v47 = vadd.f32 %v544_v45, %v293_v46 }
 0x2dc   : > { %v306_v48 = vsel %vm305_vm12, %v294_v47, inf }
 0x2dd   : > { %309 = vrot.lane.b32.xlu1 %v306_v48, %s781_s19  ;;  %v312_v51 = vmul.f32 -1.0, %v306_v48 }
 0x34f   : > { %v310_v49 = vpop.permute.xlu1 %309 }
 0x350   : > { %v311_v50 = vmul.f32 -1.0, %v310_v49 }
 0x352   : > { %v313_v52 = vmin.f32 %v274_v24, %v311_v50  ;;  %v314_v53 = vmax.f32 %v274_v24, %v311_v50 }
 0x354   : > { %v315_v54 = vmax.f32 %v314_v53, %v312_v51  ;;  %v316_v55 = vmin.f32 %v314_v53, %v312_v51  ;;  %v318_v56 = vmin.f32 %v313_v52, %v312_v51 }
 0x356   : > { %v317_v57 = vmax.f32 %v313_v52, %v316_v55  ;;  %v323_v58 = vsub.f32 %v318_v56, %v315_v54  ;;  %v411_v56 = vstv %s407_s5 }
 0x357   : > { %vm412_vm3 = vcmp.ge.s32.totalorder %v870_v1, %v411_v56 }
 0x358   : > { %v319_v59 = vsub.f32 %v317_v57, %v315_v54  ;;  %v324_v61 = vmul.f32 1.442695, %v323_v58  ;;  %v413_v57 = vstv %s1004_s4 }
 0x359   : > { %vm414_vm4 = vcmp.le.s32.totalorder %v870_v1, %v413_v57 }
 0x35a   : > { %v320_v60 = vmul.f32 1.442695, %v319_v59  ;;  %vm415_vm5 = vmand %vm412_vm3, %vm414_vm4 }
 0x35c   : > { %645 = vpow2.f32 %v320_v60  ;;  %v547_v60 = vld [vmem:[%s864_s16 + $0x30] sm:$0xff] }
 0x35d   : > { %647 = vpow2.f32 %v324_v61 }
 0x369   : > { %v646_v62 = vpop.eup %645 }
 0x36a   : > { %v322_v63 = vadd.f32 1.0, %v646_v62  ;;  %v648_v0 = vpop.eup %647 }
 0x36c   : > { %v326_v2 = vadd.f32 %v648_v0, %v322_v63 }
 0x36e   : > { %649 = vlog2.f32 %v326_v2 }
 0x37b   : > { %v650_v3 = vpop.eup %649 }
 0x37c   : > { %v328_v6 = vmul.f32 0.6931472, %v650_v3 }
 0x37e   : > { %v329_v7 = vadd.f32 %v328_v6, %v315_v54 }
 0x380   : > { %v330_v9 = vmul.f32 -1.0, %v329_v7 }
 0x382   : > { %v331_v10 = vadd.f32 %v545_v8, %v330_v9 }
 0x384   : > { %v343_v11 = vsel %vm342_vm15, %v331_v10, inf }
 0x385   : > { %346 = vrot.lane.b32.xlu0 %v343_v11, %s781_s19  ;;  %v349_v14 = vmul.f32 -1.0, %v343_v11 }
 0x3f7   : > { %v347_v12 = vpop.permute.xlu0 %346 }
 0x3f8   : > { %v348_v13 = vmul.f32 -1.0, %v347_v12 }
 0x3fa   : > { %v350_v15 = vmin.f32 %v311_v50, %v348_v13  ;;  %v351_v16 = vmax.f32 %v311_v50, %v348_v13 }
 0x3fc   : > { %v352_v17 = vmax.f32 %v351_v16, %v349_v14  ;;  %v353_v18 = vmin.f32 %v351_v16, %v349_v14  ;;  %v355_v19 = vmin.f32 %v350_v15, %v349_v14 }
 0x3fe   : > { %v354_v20 = vmax.f32 %v350_v15, %v353_v18  ;;  %v360_v21 = vsub.f32 %v355_v19, %v352_v17 }
 0x400   : > { %v356_v22 = vsub.f32 %v354_v20, %v352_v17  ;;  %v361_v24 = vmul.f32 1.442695, %v360_v21 }
 0x402   : > { %v357_v23 = vmul.f32 1.442695, %v356_v22 }
 0x404   : > { %651 = vpow2.f32 %v357_v23 }
 0x405   : > { %653 = vpow2.f32 %v361_v24 }
 0x411   : > { %v652_v25 = vpop.eup %651 }
 0x412   : > { %v359_v26 = vadd.f32 1.0, %v652_v25  ;;  %v654_v27 = vpop.eup %653 }
 0x414   : > { %v363_v28 = vadd.f32 %v654_v27, %v359_v26 }
 0x416   : > { %655 = vlog2.f32 %v363_v28 }
 0x423   : > { %v656_v29 = vpop.eup %655 }
 0x424   : > { %v365_v32 = vmul.f32 0.6931472, %v656_v29 }
 0x426   : > { %v366_v33 = vadd.f32 %v365_v32, %v352_v17 }
 0x428   : > { %v367_v35 = vmul.f32 -1.0, %v366_v33 }
 0x42a   : > { %v368_v36 = vadd.f32 %v546_v34, %v367_v35 }
 0x42c   : > { %v380_v37 = vsel %vm379_vm2, %v368_v36, inf }
 0x42d   : > { %383 = vrot.lane.b32.xlu1 %v380_v37, %s781_s19  ;;  %v386_v40 = vmul.f32 -1.0, %v380_v37 }
 0x49f   : > { %v384_v38 = vpop.permute.xlu1 %383 }
 0x4a0   : > { %v385_v39 = vmul.f32 -1.0, %v384_v38 }
 0x4a2   : > { %v387_v41 = vmin.f32 %v348_v13, %v385_v39  ;;  %v388_v42 = vmax.f32 %v348_v13, %v385_v39 }
 0x4a4   : > { %v389_v43 = vmax.f32 %v388_v42, %v386_v40  ;;  %v390_v44 = vmin.f32 %v388_v42, %v386_v40  ;;  %v392_v45 = vmin.f32 %v387_v41, %v386_v40 }
 0x4a6   : > { %v391_v46 = vmax.f32 %v387_v41, %v390_v44  ;;  %v397_v47 = vsub.f32 %v392_v45, %v389_v43 }
 0x4a8   : > { %v393_v48 = vsub.f32 %v391_v46, %v389_v43  ;;  %v398_v50 = vmul.f32 1.442695, %v397_v47 }
 0x4aa   : > { %v394_v49 = vmul.f32 1.442695, %v393_v48 }
 0x4ac   : > { %657 = vpow2.f32 %v394_v49 }
 0x4ad   : > { %659 = vpow2.f32 %v398_v50 }
 0x4b9   : > { %v658_v51 = vpop.eup %657 }
 0x4ba   : > { %v396_v52 = vadd.f32 1.0, %v658_v51  ;;  %v660_v53 = vpop.eup %659 }
 0x4bc   : > { %v400_v54 = vadd.f32 %v660_v53, %v396_v52 }
 0x4be   : > { %661 = vlog2.f32 %v400_v54 }
 0x4cb   : > { %v662_v55 = vpop.eup %661 }
 0x4cc   : > { %v402_v58 = vmul.f32 0.6931472, %v662_v55 }
 0x4ce   : > { %v403_v59 = vadd.f32 %v402_v58, %v389_v43 }
 0x4d0   : > { %v404_v61 = vmul.f32 -1.0, %v403_v59  ;;  %420 = sbr.rel (%p548_p7) target bundleno = 1238 (0x4d6), region = 36 }
 0x4d2   : > { %v405_v62 = vadd.f32 %v547_v60, %v404_v61 }
 0x4d4   : > { %v416_v63 = vsel %vm415_vm5, %v405_v62, inf }
 0x4d5   : > { %421 = vst [vmem:[#allocation7] sm:$0xff] %v416_v63 }
 0x4d6 PF: > { %424 = vrot.lane.b32.xlu0 %v416_v63, %s781_s19  ;;  %458 = vst [vmem:[#allocation3] sm:$0xff] %v416_v63  ;;  %p929_p9 = scmp.eq.s32.totalorder %s532_s12, 1  ;;  %s782_s14 = smov [#allocation7]  }
 0x4d7   : > { %s469_s15 = sshll.u32 %s782_s14, 4  ;;  %s470_s15 = int_to_ptr.vmem [resolvable:$true] %s469_s15 }
 0x4d8   : > { %s697_s20 = scalar_lea.vmem %s470_s15, 128  ;;  %p704_p13 = scmp.lt.s32.totalorder %s470_s15, %s470_s15 }
 0x4d9   : > { %p698_p10 = scmp.ne.s32.totalorder %s470_s15, %s697_s20  ;;  %p705_p0 = scmp.lt.s32.totalorder %s697_s20, %s697_s20 }
 0x4db   : > { %p699_p11 = pnand %p698_p10, %p929_p9  ;;  %p706_p1 = por %p705_p0, %p704_p13 }
 0x4dd   : > { %p700_p12 = pneg %p699_p11 }
 0x4df   : > { %p707_p2 = pnand %p706_p1, %p700_p12 }
 0x4e1   : > { %710 = shalt.err (!%p707_p2)
}
 0x4e2   : > { %558 = dma.vmem_to_hbm [thread:$0]  (%p929_p9), %s470_s15, 128, %s969_s1, [#allocation6]   ;;  %v427_v3 = vmul.f32 -1.0, %v416_v63  ;;  %v549_v23 = vld [vmem:[%s864_s16 + $0x38] sm:$0xff] }
 0x4e3   : > { %s449_s19 = sadd.s32 8, %s877_s17  ;;  %p447_p3 = scmp.gt.s32.totalorder %s881_s21, 1 }
 0x4e4   : > { %p450_p4 = scmp.lt.s32.totalorder %s449_s19, 8 }
 0x4e5   : > { %s1006_s21 = smov (!%p447_p3, %s881_s21), 1 }
 0x4e6   : > { %s1008_s19 = smov (!%p450_p4, %s449_s19), 8  ;;  %v452_v19 = vstv %s1006_s21 }
 0x4e7   : > { %v454_v20 = vstv %s1008_s19  ;;  %vm453_vm6 = vcmp.ge.s32.totalorder %v870_v1, %v452_v19 }
 0x4e8   : > { %vm455_vm7 = vcmp.le.s32.totalorder %v870_v1, %v454_v20 }
 0x4e9   : > { %vm456_vm8 = vmand %vm453_vm6, %vm455_vm7 }
 0x548   : > { %v425_v0 = vpop.permute.xlu0 %424 }
 0x549   : > { %v426_v2 = vmul.f32 -1.0, %v425_v0 }
 0x54b   : > { %v428_v4 = vmin.f32 %v385_v39, %v426_v2  ;;  %v429_v5 = vmax.f32 %v385_v39, %v426_v2 }
 0x54d   : > { %v430_v6 = vmax.f32 %v429_v5, %v427_v3  ;;  %v431_v7 = vmin.f32 %v429_v5, %v427_v3  ;;  %v433_v8 = vmin.f32 %v428_v4, %v427_v3 }
 0x54f   : > { %v432_v9 = vmax.f32 %v428_v4, %v431_v7  ;;  %v438_v10 = vsub.f32 %v433_v8, %v430_v6 }
 0x551   : > { %v434_v11 = vsub.f32 %v432_v9, %v430_v6  ;;  %v439_v13 = vmul.f32 1.442695, %v438_v10 }
 0x553   : > { %v435_v12 = vmul.f32 1.442695, %v434_v11 }
 0x555   : > { %663 = vpow2.f32 %v435_v12 }
 0x556   : > { %665 = vpow2.f32 %v439_v13 }
 0x562   : > { %v664_v14 = vpop.eup %663 }
 0x563   : > { %v437_v15 = vadd.f32 1.0, %v664_v14  ;;  %v666_v16 = vpop.eup %665 }
 0x565   : > { %v441_v17 = vadd.f32 %v666_v16, %v437_v15 }
 0x567   : > { %667 = vlog2.f32 %v441_v17 }
 0x574   : > { %v668_v18 = vpop.eup %667 }
 0x575   : > { %v443_v21 = vmul.f32 0.6931472, %v668_v18 }
 0x577   : > { %v444_v22 = vadd.f32 %v443_v21, %v430_v6 }
 0x579   : > { %v445_v24 = vmul.f32 -1.0, %v444_v22 }
 0x57b   : > { %v446_v25 = vadd.f32 %v549_v23, %v445_v24 }
 0x57d   : > { %v457_v26 = vsel %vm456_vm8, %v446_v25, inf }
 0x57e   : > { %459 = vst [vmem:[#allocation2] sm:$0xff] %v457_v26 }
 0x57f   : > { %750 = dma.done.wait (%p929_p9), [#allocation6], 128  }
 0x580   : > { %752 = vsyncadd (%p929_p9), [#allocation6], 4294967168 }
 0x581 PF: > { %s15_s11 = sadd.s32 1, %s775_s11   ;;  %s974_s6 = smov %s759_s7 }
 0x582   : > { %p12_p5 = scmp.ge.s32.totalorder %s15_s11, 4   ;;  %s975_s7 = smov %s763_s8 }
 0x583   : > { %s976_s8 = smov %s844_s18  ;;  %s977_s9 = smov %s771_s10 }
 0x584   : > { %s978_s10 = smov %s980_s13  ;;  %14 = sbr.rel (!%p12_p5) target bundleno = 5 (0x5), region = 77 }
 0x589   :  { %482 = vsyncpa [#allocation5], 1 }
 0x58a   :  { %484 = vsyncpa [#allocation5 + $0x1], 1 }
 0x58b   :  { %485 = vsyncpa [#allocation6], 1 }
 0x58c   :  { %487 = vsyncpa [#allocation6 + $0x1], 1 }

</bundles_post_ra>
